<compile_context>
chip_gen: v7x
topology: tpu7x:2x2x1
jax: 0.10.0
libtpu: 0.0.40
codegen_flags: <defaults>
</compile_context>

<pallas_src>
import jax
import jax.numpy as jnp
from jax.experimental import pallas as pl
from jax.experimental.pallas import tpu as pltpu

BN_EPS = 1e-5
MATMUL_DTYPE = jnp.bfloat16   # MXU input dtype / inter-layer activation dtype
EW_DTYPE = jnp.bfloat16       # BN affine + ReLU dtype (set jnp.float32 on v5e)
LANE = 128


def _round_up(n, m):
    return (n + m - 1) // m * m


# ----------------------------------------------------------------------------
# Kernel
# ----------------------------------------------------------------------------
def _lin_bn_relu(h, w, gamma, beta):
    """bf16 matmul (bias-free) -> train-mode BatchNorm1d -> ReLU.

    Stats (mean / two-pass biased variance) are f32; the affine + ReLU runs in
    EW_DTYPE and the result is returned in MATMUL_DTYPE so activations stay
    bf16 between layers.
    """
    z = jnp.dot(h, w, preferred_element_type=jnp.float32)       # MXU, f32 acc
    mu = jnp.mean(z, axis=0, keepdims=True)                     # f32 sublane reduce
    d = z - mu                                                   # f32: cancellation-safe
    var = jnp.mean(d * d, axis=0, keepdims=True)                 # biased var (PyTorch fwd)
    scale = gamma * jax.lax.rsqrt(var + BN_EPS)                  # fold gamma into inv-std
    h_out = jnp.maximum(d.astype(EW_DTYPE) * scale.astype(EW_DTYPE)
                        + beta.astype(EW_DTYPE), 0.0)
    return h_out.astype(MATMUL_DTYPE)


def make_kernel(layer_geom):
    """layer_geom: 5 tuples (row_offset_in_packed, din_padded, dout_padded).
    Layer 0 reads w1_ref; layers 1..4 take static, lane/sublane-aligned slices
    of the packed weight array (zero-cost views)."""

    def kernel(x_ref, w1_ref, wpk_ref, gb_ref, head_ref, out_ref):
        h = x_ref[...]                                           # bf16 (batch, in)
        for i, (off, din, dout) in enumerate(layer_geom):
            if i == 0:
                w = w1_ref[...]                                  # (in, dout0)
            else:
                w = wpk_ref[off:off + din, :dout]                # static aligned slice
            gamma = gb_ref[2 * i:2 * i + 1, :dout]
            beta = gb_ref[2 * i + 1:2 * i + 2, :dout]
            h = _lin_bn_relu(h, w, gamma, beta)
        # Output head: (hidden -> 1) as a VPU multiply + f32 lane reduction
        # (avoids an MXU drain for a 1-column matmul).
        wo_row = head_ref[0:1, :]                                # (1, dout5) f32
        bo = head_ref[1:2, 0:1]                                  # (1, 1) f32
        logits = jnp.sum(h * wo_row, axis=-1, keepdims=True) + bo
        out_ref[...] = jax.nn.sigmoid(logits)

    return kernel


# ----------------------------------------------------------------------------
# Host-side packing + wrapper
# ----------------------------------------------------------------------------
def pack_params(params):
    """Repack the PyTorch-style flat param list for the kernel.

    Input layout (PyTorch-equivalent): [w, b, gamma, beta] x 5  +  [wo, bo]
      w: (din, dout) (already transposed vs. nn.Linear.weight)
      b / gamma / beta: (1, dout)    wo: (hidden, 1)    bo: (1, 1)

    Returns (w1, wpk, gb, head), geom:
      w1:   (input_size, W1) bf16, layer-1 weight, zero-padded columns
      wpk:  layers 2-5, each zero-padded to (W_{i-1}, W_i), sublane-concatenated
      gb:   (10, Wmax) f32, rows [g1, be1, ..., g5, be5], zero padded
      head: (2, W5) f32, row0 = wo^T zero padded, row1[0] = bo
    Linear biases b1..b5 are dropped (they cancel under train-mode BatchNorm).
    """
    ws, gs, bes = [], [], []
    for i in range(5):
        w, _b, g, be = params[4 * i:4 * i + 4]
        ws.append(w)
        gs.append(jnp.reshape(g, (-1,)))
        bes.append(jnp.reshape(be, (-1,)))
    douts = [int(w.shape[1]) for w in ws]
    wpad = [_round_up(d, LANE) for d in douts]     # lane-aligned feature widths
    wmax = max(wpad)
    din0 = int(ws[0].shape[0])

    w1 = jnp.zeros((din0, wpad[0]), MATMUL_DTYPE)
    w1 = w1.at[:, :douts[0]].set(ws[0].astype(MATMUL_DTYPE))

    blocks, layer_geom, off = [], [(0, din0, wpad[0])], 0
    for i in range(1, 5):
        din_pad = wpad[i - 1]
        blk = jnp.zeros((din_pad, wmax), MATMUL_DTYPE)
        blk = blk.at[:douts[i - 1], :douts[i]].set(ws[i].astype(MATMUL_DTYPE))
        blocks.append(blk)
        layer_geom.append((off, din_pad, wpad[i]))
        off += din_pad
    wpk = jnp.concatenate(blocks, axis=0)

    gb = jnp.zeros((10, wmax), jnp.float32)
    for i in range(5):
        gb = gb.at[2 * i, :douts[i]].set(gs[i].astype(jnp.float32))
        gb = gb.at[2 * i + 1, :douts[i]].set(bes[i].astype(jnp.float32))

    wo, bo = params[-2:]
    head = jnp.zeros((2, wpad[4]), jnp.float32)
    head = head.at[0, :int(wo.shape[0])].set(
        jnp.reshape(wo, (-1,)).astype(jnp.float32))
    head = head.at[1, 0].set(jnp.reshape(bo, (-1,))[0].astype(jnp.float32))

    geom = {"layers": tuple(layer_geom), "wmax": wmax}
    return (w1, wpk, gb, head), geom


def _vmem_limit_bytes(operand_bytes, batch, wmax):
    """Request a scoped-VMEM limit only when the single-block footprint would
    exceed the smallest default scoped VMEM (v5e: 16 MiB)."""
    act_bytes = batch * wmax * 4 * 8          # f32 z/d + temporaries, generous
    est = operand_bytes + act_bytes + (1 << 20)
    if est <= (16 << 20):
        return None
    # TODO(synk): beyond ~48 MiB prefer the batch-tiled grid (v7x physical VMEM
    # is only 64 MiB); here we just raise the scoped limit with headroom.
    return int(min(est * 3 // 2, 64 << 20))


def disaster_tweet_classifier(x, packed, geom):
    """x: (batch, input_size), any float dtype (bf16 preferred upstream: the
    kernel never needs f32 x).  packed/geom: output of pack_params()."""
    w1, wpk, gb, head = packed
    batch = int(x.shape[0])
    x = x if x.dtype == MATMUL_DTYPE else x.astype(MATMUL_DTYPE)
    operands = (x, w1, wpk, gb, head)
    operand_bytes = sum(int(a.size) * a.dtype.itemsize for a in operands)
    limit = _vmem_limit_bytes(operand_bytes, batch, geom["wmax"])
    compiler_params = (None if limit is None
                       else pltpu.CompilerParams(vmem_limit_bytes=limit))
    vmem = pl.BlockSpec(memory_space=pltpu.MemorySpace.VMEM)
    return pl.pallas_call(
        make_kernel(geom["layers"]),
        out_shape=jax.ShapeDtypeStruct((batch, 1), jnp.float32),
        in_specs=[vmem] * len(operands),
        out_specs=vmem,
        compiler_params=compiler_params,
    )(*operands)


# ----------------------------------------------------------------------------
# Init + references
# ----------------------------------------------------------------------------
def init_params(key, input_size, hidden_size, output_size=1):
    """Synthetic params mirroring the PyTorch module's shapes (weights stored
    as (in, out)); gamma/beta randomized (not 1/0) to exercise the packing."""
    dims = [
        (input_size, hidden_size * 4),
        (hidden_size * 4, hidden_size * 4),
        (hidden_size * 4, hidden_size * 3),
        (hidden_size * 3, hidden_size * 2),
        (hidden_size * 2, hidden_size),
    ]
    params = []
    keys = jax.random.split(key, len(dims) + 1)
    for k, (din, dout) in zip(keys[:-1], dims):
        kw, kb, kg, ke = jax.random.split(k, 4)
        bound = 1.0 / jnp.sqrt(din)
        w = jax.random.uniform(kw, (din, dout), jnp.float32, -bound, bound)
        b = jax.random.uniform(kb, (1, dout), jnp.float32, -bound, bound)
        gamma = jax.random.uniform(kg, (1, dout), jnp.float32, 0.5, 1.5)
        beta = 0.1 * jax.random.normal(ke, (1, dout), jnp.float32)
        params += [w, b, gamma, beta]
    din, dout = hidden_size, output_size
    kw, kb = jax.random.split(keys[-1])
    bound = 1.0 / jnp.sqrt(din)
    wo = jax.random.uniform(kw, (din, dout), jnp.float32, -bound, bound)
    bo = jax.random.uniform(kb, (1, dout), jnp.float32, -bound, bound)
    params += [wo, bo]
    return params


def _reference(x, params, matmul_dtype, ew_dtype):
    """PyTorch-equivalent forward (train-mode BN, biased two-pass variance,
    linear biases kept) at the given precision choices."""
    h = x.astype(matmul_dtype)
    for i in range(5):
        w, b, g, be = params[4 * i:4 * i + 4]
        z = jnp.dot(h, w.astype(matmul_dtype),
                    preferred_element_type=jnp.float32) + b
        mu = jnp.mean(z, axis=0, keepdims=True)
        d = z - mu
        var = jnp.mean(d * d, axis=0, keepdims=True)
        scale = g * jax.lax.rsqrt(var + BN_EPS)
        h = jnp.maximum(d.astype(ew_dtype) * scale.astype(ew_dtype)
                        + be.astype(ew_dtype), 0.0).astype(matmul_dtype)
    wo, bo = params[-2:]
    logits = (jnp.sum(h.astype(jnp.float32) * jnp.reshape(wo, (1, -1)),
                      axis=-1, keepdims=True) + jnp.reshape(bo, (1, 1)))
    return jax.nn.sigmoid(logits)


def reference_matched(x, params):
    """Same precision choices as the kernel (bf16 matmuls + bf16 affine/ReLU)."""
    return _reference(x, params, MATMUL_DTYPE, EW_DTYPE)


def reference_f32(x, params):
    """Full-f32 PyTorch-equivalent forward."""
    return _reference(x, params, jnp.float32, jnp.float32)


# ----------------------------------------------------------------------------
if __name__ == "__main__":
    key = jax.random.PRNGKey(0)
    k_x, k_p = jax.random.split(key)

    batch, input_size, hidden_size = 8, 64, 32   # small synthetic sizes
    x = jax.random.normal(k_x, (batch, input_size), jnp.float32)
    params = init_params(k_p, input_size, hidden_size, output_size=1)
    packed, geom = pack_params(params)

    out = disaster_tweet_classifier(x, packed, geom)
    out = jax.block_until_ready(out)
    assert out.shape == (batch, 1), out.shape
    assert bool(jnp.all(jnp.isfinite(out)))

    # Primary check: matched-precision reference.
    ref_m = reference_matched(x, params)
    assert jnp.allclose(out, ref_m, atol=2e-2, rtol=2e-2), (out, ref_m)
    # Sanity check vs. full-f32 PyTorch math (loose: bf16 matmul/pointwise).
    ref_f = reference_f32(x, params)
    assert jnp.allclose(out, ref_f, atol=8e-2, rtol=8e-2), (out, ref_f)

    print("KERNEL_OK")
</pallas_src>

<mosaic_0001>
module attributes {stable_mosaic.version = 11 : i64} {
  func.func @kernel(%arg0: memref<8x64xbf16, #tpu.memory_space<vmem>>, %arg1: memref<64x128xbf16, #tpu.memory_space<vmem>>, %arg2: memref<512x128xbf16, #tpu.memory_space<vmem>>, %arg3: memref<10x128xf32, #tpu.memory_space<vmem>>, %arg4: memref<2x128xf32, #tpu.memory_space<vmem>>, %arg5: memref<8x1xf32, #tpu.memory_space<vmem>>) attributes {dimension_semantics = [], scalar_prefetch = 0 : i64, scratch_operands = 0 : i64, tpu.core_type = #tpu.core_type<tc>} {
    %c0 = arith.constant 0 : index
    %c0_0 = arith.constant 0 : index
    %0 = vector.load %arg0[%c0, %c0_0] : memref<8x64xbf16, #tpu.memory_space<vmem>>, vector<8x64xbf16>
    %c0_1 = arith.constant 0 : index
    %c0_2 = arith.constant 0 : index
    %1 = vector.load %arg1[%c0_1, %c0_2] : memref<64x128xbf16, #tpu.memory_space<vmem>>, vector<64x128xbf16>
    %c0_3 = arith.constant 0 : index
    %c0_4 = arith.constant 0 : index
    %2 = vector.load %arg3[%c0_3, %c0_4] : memref<10x128xf32, #tpu.memory_space<vmem>>, vector<1x128xf32>
    %c1 = arith.constant 1 : index
    %c0_5 = arith.constant 0 : index
    %3 = vector.load %arg3[%c1, %c0_5] : memref<10x128xf32, #tpu.memory_space<vmem>>, vector<1x128xf32>
    %cst = arith.constant dense<0.000000e+00> : vector<8x128xf32>
    %4 = tpu.matmul %0, %1, %cst {dimension_numbers = #tpu.dot_dimension_numbers<[1], [0], [0], [1], [0, 0, 1, 1], [], []>} : vector<8x64xbf16>, vector<64x128xbf16>, vector<8x128xf32> -> vector<8x128xf32>
    %cst_6 = arith.constant dense<0.000000e+00> : vector<128xf32>
    %5 = vector.multi_reduction <add>, %4, %cst_6 [0] : vector<8x128xf32> to vector<128xf32>
    %6 = vector.shape_cast %5 : vector<128xf32> to vector<1x128xf32>
    %cst_7 = arith.constant 8.000000e+00 : f32
    %7 = vector.broadcast %cst_7 : f32 to vector<1x128xf32>
    %8 = arith.divf %6, %7 : vector<1x128xf32>
    %9 = vector.broadcast %8 : vector<1x128xf32> to vector<8x128xf32>
    %10 = arith.subf %4, %9 : vector<8x128xf32>
    %11 = arith.mulf %10, %10 : vector<8x128xf32>
    %cst_8 = arith.constant dense<0.000000e+00> : vector<128xf32>
    %12 = vector.multi_reduction <add>, %11, %cst_8 [0] : vector<8x128xf32> to vector<128xf32>
    %13 = vector.shape_cast %12 : vector<128xf32> to vector<1x128xf32>
    %cst_9 = arith.constant 8.000000e+00 : f32
    %14 = vector.broadcast %cst_9 : f32 to vector<1x128xf32>
    %15 = arith.divf %13, %14 : vector<1x128xf32>
    %cst_10 = arith.constant 9.99999974E-6 : f32
    %16 = vector.broadcast %cst_10 : f32 to vector<1x128xf32>
    %17 = arith.addf %15, %16 : vector<1x128xf32>
    %18 = math.rsqrt %17 : vector<1x128xf32>
    %19 = arith.mulf %2, %18 : vector<1x128xf32>
    %20 = arith.truncf %10 : vector<8x128xf32> to vector<8x128xbf16>
    %21 = arith.truncf %19 : vector<1x128xf32> to vector<1x128xbf16>
    %22 = vector.broadcast %21 : vector<1x128xbf16> to vector<8x128xbf16>
    %23 = arith.mulf %20, %22 : vector<8x128xbf16>
    %24 = arith.truncf %3 : vector<1x128xf32> to vector<1x128xbf16>
    %25 = vector.broadcast %24 : vector<1x128xbf16> to vector<8x128xbf16>
    %26 = arith.addf %23, %25 : vector<8x128xbf16>
    %cst_11 = arith.constant 0.000000e+00 : bf16
    %27 = vector.broadcast %cst_11 : bf16 to vector<8x128xbf16>
    %28 = arith.maximumf %26, %27 : vector<8x128xbf16>
    %c0_12 = arith.constant 0 : index
    %c0_13 = arith.constant 0 : index
    %29 = vector.load %arg2[%c0_12, %c0_13] : memref<512x128xbf16, #tpu.memory_space<vmem>>, vector<128x128xbf16>
    %c2 = arith.constant 2 : index
    %c0_14 = arith.constant 0 : index
    %30 = vector.load %arg3[%c2, %c0_14] : memref<10x128xf32, #tpu.memory_space<vmem>>, vector<1x128xf32>
    %c3 = arith.constant 3 : index
    %c0_15 = arith.constant 0 : index
    %31 = vector.load %arg3[%c3, %c0_15] : memref<10x128xf32, #tpu.memory_space<vmem>>, vector<1x128xf32>
    %cst_16 = arith.constant dense<0.000000e+00> : vector<8x128xf32>
    %32 = tpu.matmul %28, %29, %cst_16 {dimension_numbers = #tpu.dot_dimension_numbers<[1], [0], [0], [1], [0, 0, 1, 1], [], []>} : vector<8x128xbf16>, vector<128x128xbf16>, vector<8x128xf32> -> vector<8x128xf32>
    %cst_17 = arith.constant dense<0.000000e+00> : vector<128xf32>
    %33 = vector.multi_reduction <add>, %32, %cst_17 [0] : vector<8x128xf32> to vector<128xf32>
    %34 = vector.shape_cast %33 : vector<128xf32> to vector<1x128xf32>
    %cst_18 = arith.constant 8.000000e+00 : f32
    %35 = vector.broadcast %cst_18 : f32 to vector<1x128xf32>
    %36 = arith.divf %34, %35 : vector<1x128xf32>
    %37 = vector.broadcast %36 : vector<1x128xf32> to vector<8x128xf32>
    %38 = arith.subf %32, %37 : vector<8x128xf32>
    %39 = arith.mulf %38, %38 : vector<8x128xf32>
    %cst_19 = arith.constant dense<0.000000e+00> : vector<128xf32>
    %40 = vector.multi_reduction <add>, %39, %cst_19 [0] : vector<8x128xf32> to vector<128xf32>
    %41 = vector.shape_cast %40 : vector<128xf32> to vector<1x128xf32>
    %cst_20 = arith.constant 8.000000e+00 : f32
    %42 = vector.broadcast %cst_20 : f32 to vector<1x128xf32>
    %43 = arith.divf %41, %42 : vector<1x128xf32>
    %cst_21 = arith.constant 9.99999974E-6 : f32
    %44 = vector.broadcast %cst_21 : f32 to vector<1x128xf32>
    %45 = arith.addf %43, %44 : vector<1x128xf32>
    %46 = math.rsqrt %45 : vector<1x128xf32>
    %47 = arith.mulf %30, %46 : vector<1x128xf32>
    %48 = arith.truncf %38 : vector<8x128xf32> to vector<8x128xbf16>
    %49 = arith.truncf %47 : vector<1x128xf32> to vector<1x128xbf16>
    %50 = vector.broadcast %49 : vector<1x128xbf16> to vector<8x128xbf16>
    %51 = arith.mulf %48, %50 : vector<8x128xbf16>
    %52 = arith.truncf %31 : vector<1x128xf32> to vector<1x128xbf16>
    %53 = vector.broadcast %52 : vector<1x128xbf16> to vector<8x128xbf16>
    %54 = arith.addf %51, %53 : vector<8x128xbf16>
    %cst_22 = arith.constant 0.000000e+00 : bf16
    %55 = vector.broadcast %cst_22 : bf16 to vector<8x128xbf16>
    %56 = arith.maximumf %54, %55 : vector<8x128xbf16>
    %c128 = arith.constant 128 : index
    %c0_23 = arith.constant 0 : index
    %57 = vector.load %arg2[%c128, %c0_23] : memref<512x128xbf16, #tpu.memory_space<vmem>>, vector<128x128xbf16>
    %c4 = arith.constant 4 : index
    %c0_24 = arith.constant 0 : index
    %58 = vector.load %arg3[%c4, %c0_24] : memref<10x128xf32, #tpu.memory_space<vmem>>, vector<1x128xf32>
    %c5 = arith.constant 5 : index
    %c0_25 = arith.constant 0 : index
    %59 = vector.load %arg3[%c5, %c0_25] : memref<10x128xf32, #tpu.memory_space<vmem>>, vector<1x128xf32>
    %cst_26 = arith.constant dense<0.000000e+00> : vector<8x128xf32>
    %60 = tpu.matmul %56, %57, %cst_26 {dimension_numbers = #tpu.dot_dimension_numbers<[1], [0], [0], [1], [0, 0, 1, 1], [], []>} : vector<8x128xbf16>, vector<128x128xbf16>, vector<8x128xf32> -> vector<8x128xf32>
    %cst_27 = arith.constant dense<0.000000e+00> : vector<128xf32>
    %61 = vector.multi_reduction <add>, %60, %cst_27 [0] : vector<8x128xf32> to vector<128xf32>
    %62 = vector.shape_cast %61 : vector<128xf32> to vector<1x128xf32>
    %cst_28 = arith.constant 8.000000e+00 : f32
    %63 = vector.broadcast %cst_28 : f32 to vector<1x128xf32>
    %64 = arith.divf %62, %63 : vector<1x128xf32>
    %65 = vector.broadcast %64 : vector<1x128xf32> to vector<8x128xf32>
    %66 = arith.subf %60, %65 : vector<8x128xf32>
    %67 = arith.mulf %66, %66 : vector<8x128xf32>
    %cst_29 = arith.constant dense<0.000000e+00> : vector<128xf32>
    %68 = vector.multi_reduction <add>, %67, %cst_29 [0] : vector<8x128xf32> to vector<128xf32>
    %69 = vector.shape_cast %68 : vector<128xf32> to vector<1x128xf32>
    %cst_30 = arith.constant 8.000000e+00 : f32
    %70 = vector.broadcast %cst_30 : f32 to vector<1x128xf32>
    %71 = arith.divf %69, %70 : vector<1x128xf32>
    %cst_31 = arith.constant 9.99999974E-6 : f32
    %72 = vector.broadcast %cst_31 : f32 to vector<1x128xf32>
    %73 = arith.addf %71, %72 : vector<1x128xf32>
    %74 = math.rsqrt %73 : vector<1x128xf32>
    %75 = arith.mulf %58, %74 : vector<1x128xf32>
    %76 = arith.truncf %66 : vector<8x128xf32> to vector<8x128xbf16>
    %77 = arith.truncf %75 : vector<1x128xf32> to vector<1x128xbf16>
    %78 = vector.broadcast %77 : vector<1x128xbf16> to vector<8x128xbf16>
    %79 = arith.mulf %76, %78 : vector<8x128xbf16>
    %80 = arith.truncf %59 : vector<1x128xf32> to vector<1x128xbf16>
    %81 = vector.broadcast %80 : vector<1x128xbf16> to vector<8x128xbf16>
    %82 = arith.addf %79, %81 : vector<8x128xbf16>
    %cst_32 = arith.constant 0.000000e+00 : bf16
    %83 = vector.broadcast %cst_32 : bf16 to vector<8x128xbf16>
    %84 = arith.maximumf %82, %83 : vector<8x128xbf16>
    %c256 = arith.constant 256 : index
    %c0_33 = arith.constant 0 : index
    %85 = vector.load %arg2[%c256, %c0_33] : memref<512x128xbf16, #tpu.memory_space<vmem>>, vector<128x128xbf16>
    %c6 = arith.constant 6 : index
    %c0_34 = arith.constant 0 : index
    %86 = vector.load %arg3[%c6, %c0_34] : memref<10x128xf32, #tpu.memory_space<vmem>>, vector<1x128xf32>
    %c7 = arith.constant 7 : index
    %c0_35 = arith.constant 0 : index
    %87 = vector.load %arg3[%c7, %c0_35] : memref<10x128xf32, #tpu.memory_space<vmem>>, vector<1x128xf32>
    %cst_36 = arith.constant dense<0.000000e+00> : vector<8x128xf32>
    %88 = tpu.matmul %84, %85, %cst_36 {dimension_numbers = #tpu.dot_dimension_numbers<[1], [0], [0], [1], [0, 0, 1, 1], [], []>} : vector<8x128xbf16>, vector<128x128xbf16>, vector<8x128xf32> -> vector<8x128xf32>
    %cst_37 = arith.constant dense<0.000000e+00> : vector<128xf32>
    %89 = vector.multi_reduction <add>, %88, %cst_37 [0] : vector<8x128xf32> to vector<128xf32>
    %90 = vector.shape_cast %89 : vector<128xf32> to vector<1x128xf32>
    %cst_38 = arith.constant 8.000000e+00 : f32
    %91 = vector.broadcast %cst_38 : f32 to vector<1x128xf32>
    %92 = arith.divf %90, %91 : vector<1x128xf32>
    %93 = vector.broadcast %92 : vector<1x128xf32> to vector<8x128xf32>
    %94 = arith.subf %88, %93 : vector<8x128xf32>
    %95 = arith.mulf %94, %94 : vector<8x128xf32>
    %cst_39 = arith.constant dense<0.000000e+00> : vector<128xf32>
    %96 = vector.multi_reduction <add>, %95, %cst_39 [0] : vector<8x128xf32> to vector<128xf32>
    %97 = vector.shape_cast %96 : vector<128xf32> to vector<1x128xf32>
    %cst_40 = arith.constant 8.000000e+00 : f32
    %98 = vector.broadcast %cst_40 : f32 to vector<1x128xf32>
    %99 = arith.divf %97, %98 : vector<1x128xf32>
    %cst_41 = arith.constant 9.99999974E-6 : f32
    %100 = vector.broadcast %cst_41 : f32 to vector<1x128xf32>
    %101 = arith.addf %99, %100 : vector<1x128xf32>
    %102 = math.rsqrt %101 : vector<1x128xf32>
    %103 = arith.mulf %86, %102 : vector<1x128xf32>
    %104 = arith.truncf %94 : vector<8x128xf32> to vector<8x128xbf16>
    %105 = arith.truncf %103 : vector<1x128xf32> to vector<1x128xbf16>
    %106 = vector.broadcast %105 : vector<1x128xbf16> to vector<8x128xbf16>
    %107 = arith.mulf %104, %106 : vector<8x128xbf16>
    %108 = arith.truncf %87 : vector<1x128xf32> to vector<1x128xbf16>
    %109 = vector.broadcast %108 : vector<1x128xbf16> to vector<8x128xbf16>
    %110 = arith.addf %107, %109 : vector<8x128xbf16>
    %cst_42 = arith.constant 0.000000e+00 : bf16
    %111 = vector.broadcast %cst_42 : bf16 to vector<8x128xbf16>
    %112 = arith.maximumf %110, %111 : vector<8x128xbf16>
    %c384 = arith.constant 384 : index
    %c0_43 = arith.constant 0 : index
    %113 = vector.load %arg2[%c384, %c0_43] : memref<512x128xbf16, #tpu.memory_space<vmem>>, vector<128x128xbf16>
    %c8 = arith.constant 8 : index
    %c0_44 = arith.constant 0 : index
    %114 = vector.load %arg3[%c8, %c0_44] : memref<10x128xf32, #tpu.memory_space<vmem>>, vector<1x128xf32>
    %c9 = arith.constant 9 : index
    %c0_45 = arith.constant 0 : index
    %115 = vector.load %arg3[%c9, %c0_45] : memref<10x128xf32, #tpu.memory_space<vmem>>, vector<1x128xf32>
    %cst_46 = arith.constant dense<0.000000e+00> : vector<8x128xf32>
    %116 = tpu.matmul %112, %113, %cst_46 {dimension_numbers = #tpu.dot_dimension_numbers<[1], [0], [0], [1], [0, 0, 1, 1], [], []>} : vector<8x128xbf16>, vector<128x128xbf16>, vector<8x128xf32> -> vector<8x128xf32>
    %cst_47 = arith.constant dense<0.000000e+00> : vector<128xf32>
    %117 = vector.multi_reduction <add>, %116, %cst_47 [0] : vector<8x128xf32> to vector<128xf32>
    %118 = vector.shape_cast %117 : vector<128xf32> to vector<1x128xf32>
    %cst_48 = arith.constant 8.000000e+00 : f32
    %119 = vector.broadcast %cst_48 : f32 to vector<1x128xf32>
    %120 = arith.divf %118, %119 : vector<1x128xf32>
    %121 = vector.broadcast %120 : vector<1x128xf32> to vector<8x128xf32>
    %122 = arith.subf %116, %121 : vector<8x128xf32>
    %123 = arith.mulf %122, %122 : vector<8x128xf32>
    %cst_49 = arith.constant dense<0.000000e+00> : vector<128xf32>
    %124 = vector.multi_reduction <add>, %123, %cst_49 [0] : vector<8x128xf32> to vector<128xf32>
    %125 = vector.shape_cast %124 : vector<128xf32> to vector<1x128xf32>
    %cst_50 = arith.constant 8.000000e+00 : f32
    %126 = vector.broadcast %cst_50 : f32 to vector<1x128xf32>
    %127 = arith.divf %125, %126 : vector<1x128xf32>
    %cst_51 = arith.constant 9.99999974E-6 : f32
    %128 = vector.broadcast %cst_51 : f32 to vector<1x128xf32>
    %129 = arith.addf %127, %128 : vector<1x128xf32>
    %130 = math.rsqrt %129 : vector<1x128xf32>
    %131 = arith.mulf %114, %130 : vector<1x128xf32>
    %132 = arith.truncf %122 : vector<8x128xf32> to vector<8x128xbf16>
    %133 = arith.truncf %131 : vector<1x128xf32> to vector<1x128xbf16>
    %134 = vector.broadcast %133 : vector<1x128xbf16> to vector<8x128xbf16>
    %135 = arith.mulf %132, %134 : vector<8x128xbf16>
    %136 = arith.truncf %115 : vector<1x128xf32> to vector<1x128xbf16>
    %137 = vector.broadcast %136 : vector<1x128xbf16> to vector<8x128xbf16>
    %138 = arith.addf %135, %137 : vector<8x128xbf16>
    %cst_52 = arith.constant 0.000000e+00 : bf16
    %139 = vector.broadcast %cst_52 : bf16 to vector<8x128xbf16>
    %140 = arith.maximumf %138, %139 : vector<8x128xbf16>
    %c0_53 = arith.constant 0 : index
    %c0_54 = arith.constant 0 : index
    %141 = vector.load %arg4[%c0_53, %c0_54] : memref<2x128xf32, #tpu.memory_space<vmem>>, vector<1x128xf32>
    %c1_55 = arith.constant 1 : index
    %c0_56 = arith.constant 0 : index
    %142 = vector.load %arg4[%c1_55, %c0_56] : memref<2x128xf32, #tpu.memory_space<vmem>>, vector<1x1xf32>
    %143 = arith.extf %140 : vector<8x128xbf16> to vector<8x128xf32>
    %144 = vector.broadcast %141 : vector<1x128xf32> to vector<8x128xf32>
    %145 = arith.mulf %143, %144 : vector<8x128xf32>
    %cst_57 = arith.constant dense<0.000000e+00> : vector<8xf32>
    %146 = vector.multi_reduction <add>, %145, %cst_57 [1] : vector<8x128xf32> to vector<8xf32>
    %147 = vector.shape_cast %146 : vector<8xf32> to vector<8x1xf32>
    %148 = vector.broadcast %142 : vector<1x1xf32> to vector<8x1xf32>
    %149 = arith.addf %147, %148 : vector<8x1xf32>
    %150 = arith.negf %149 : vector<8x1xf32>
    %151 = math.exp %150 : vector<8x1xf32>
    %cst_58 = arith.constant 1.000000e+00 : f32
    %152 = vector.broadcast %cst_58 : f32 to vector<8x1xf32>
    %153 = arith.addf %152, %151 : vector<8x1xf32>
    %154 = arith.divf %152, %153 : vector<8x1xf32>
    %c0_59 = arith.constant 0 : index
    %c0_60 = arith.constant 0 : index
    %155 = vector.load %arg5[%c0_59, %c0_60] : memref<8x1xf32, #tpu.memory_space<vmem>>, vector<8x1xf32>
    tpu.vector_store %arg5[%c0_59, %c0_60], %154 {strides = array<i32>} : memref<8x1xf32, #tpu.memory_space<vmem>>, vector<8x1xf32>,
    return
  }
}

</mosaic_0001>

<bundles_post_ra>
// kernel: tpu_custom_call.1
= control target key start
LH: loop header
LB: loop body
LE: loop exit
PB: predicated region body
PF: predicated region fallthrough
CT: control target
= control target key end

     0   :  { %10 = vsyncpa [#allocation3], 0  ;;  %s1298_s0 = inlined_call_operand.hbm [shape: bf16[8,64], index: 0, kind: input, shape index: {}]   ;;  %s1299_s1 = inlined_call_operand.hbm [shape: bf16[64,128], index: 1, kind: input, shape index: {}]   ;;  %s1300_s2 = inlined_call_operand.hbm [shape: bf16[512,128], index: 2, kind: input, shape index: {}]   ;;  %s1301_s3 = inlined_call_operand.hbm [shape: f32[10,128], index: 3, kind: input, shape index: {}]   ;;  %s1302_s4 = inlined_call_operand.vmem [shape: f32[2,128], index: 4, kind: input, shape index: {}]   ;;  %s1303_s5 = inlined_call_operand.vmem [shape: f32[8,1], index: 5, kind: output, shape index: {}]  }
   0x1   :  { %11 = vsyncpa [#allocation5], 0 }
   0x2   :  { %12 = vsyncpa [#allocation8], 0  ;;  %s1131_s18 = smov [#allocation4]   ;;  %s1037_s22 = scalar_lea.hbm %s1299_s1, 512 }
   0x3   :  { %s28_s19 = sshll.u32 %s1131_s18, 4  ;;  %p1038_p0 = scmp.ne.s32.totalorder %s1299_s1, %s1037_s22  ;;  %s29_s19 = int_to_ptr.vmem [resolvable:$true] %s28_s19 }
   0x4   :  { %p1041_p1 = scmp.lt.u32.totalorder %s1037_s22, %s1299_s1 }
   0x6   :  { %p1043_p2 = pnand %p1041_p1, %p1038_p0 }
   0x8   :  { %1046 = shalt.err (!%p1043_p2)
}
   0x9   :  { %s1047_s27 = scalar_lea.vmem %s29_s19, 512  ;;  %p1052_p4 = scmp.lt.s32.totalorder %s29_s19, %s29_s19 }
   0xa   :  { %p1048_p3 = scmp.ne.s32.totalorder %s29_s19, %s1047_s27  ;;  %p1053_p5 = scmp.lt.s32.totalorder %s1047_s27, %s1047_s27 }
   0xc   :  { %p1054_p6 = por %p1053_p5, %p1052_p4 }
   0xe   :  { %p1055_p7 = pnand %p1054_p6, %p1048_p3 }
  0x10   :  { %1058 = shalt.err (!%p1055_p7)
}
  0x11   :  { %s1132_s28 = smov 64   ;;  %s1133_s29 = smov 4  }
  0x12   :  { %34 = dma.hbm_to_vmem [thread:$0]  %s1299_s1, 512, %s29_s19, [#allocation5], %s1132_s28, %s1132_s28, %s1133_s29  }
  0x13   :  { %s1134_s7 = smov [#allocation2]   ;;  %s1135_s9 = smov [#allocation6]  }
  0x14   :  { %s19_s8 = sshll.u32 %s1134_s7, 4  ;;  %s40_s10 = sshll.u32 %s1135_s9, 4  ;;  %s20_s8 = int_to_ptr.vmem [resolvable:$true] %s19_s8  ;;  %s41_s10 = int_to_ptr.vmem [resolvable:$true] %s40_s10 }
  0x15   :  { %s1059_s13 = scalar_lea.hbm %s1298_s0, 64 }
  0x16   :  { %p1060_p8 = scmp.ne.s32.totalorder %s1298_s0, %s1059_s13  ;;  %p1063_p9 = scmp.lt.u32.totalorder %s1059_s13, %s1298_s0 }
  0x18   :  { %p1065_p10 = pnand %p1063_p9, %p1060_p8 }
  0x1a   :  { %1068 = shalt.err (!%p1065_p10)
}
  0x1b   :  { %s1069_s1 = scalar_lea.vmem %s20_s8, 64  ;;  %p1074_p12 = scmp.lt.s32.totalorder %s20_s8, %s20_s8 }
  0x1c   :  { %p1070_p11 = scmp.ne.s32.totalorder %s20_s8, %s1069_s1  ;;  %p1075_p13 = scmp.lt.s32.totalorder %s1069_s1, %s1069_s1 }
  0x1e   :  { %p1076_p0 = por %p1075_p13, %p1074_p12 }
  0x20   :  { %p1077_p1 = pnand %p1076_p0, %p1070_p11 }
  0x22   :  { %1080 = shalt.err (!%p1077_p1)
}
  0x23   :  { %22 = dma.hbm_to_vmem [thread:$0]  %s1298_s0, 64, %s20_s8, [#allocation3]  }
  0x24   :  { %s1081_s22 = scalar_lea.hbm %s1300_s2, 4096 }
  0x25   :  { %p1082_p2 = scmp.ne.s32.totalorder %s1300_s2, %s1081_s22  ;;  %p1085_p3 = scmp.lt.u32.totalorder %s1081_s22, %s1300_s2 }
  0x27   :  { %p1087_p4 = pnand %p1085_p3, %p1082_p2 }
  0x29   :  { %1090 = shalt.err (!%p1087_p4)
}
  0x2a   :  { %s1091_s27 = scalar_lea.vmem %s41_s10, 4096  ;;  %p1096_p6 = scmp.lt.s32.totalorder %s41_s10, %s41_s10 }
  0x2b   :  { %p1092_p5 = scmp.ne.s32.totalorder %s41_s10, %s1091_s27  ;;  %p1097_p7 = scmp.lt.s32.totalorder %s1091_s27, %s1091_s27 }
  0x2d   :  { %p1098_p8 = por %p1097_p7, %p1096_p6 }
  0x2f   :  { %p1099_p9 = pnand %p1098_p8, %p1092_p5 }
  0x31   :  { %1102 = shalt.err (!%p1099_p9)
}
  0x32   :  { %46 = dma.hbm_to_vmem [thread:$0]  %s1300_s2, 4096, %s41_s10, [#allocation5], %s1132_s28, %s1132_s28, %s1133_s29  }
  0x33   :  { %s1136_s6 = smov [#allocation7]   ;;  %s1103_s11 = scalar_lea.hbm %s1301_s3, 256 }
  0x34   :  { %s52_s7 = sshll.u32 %s1136_s6, 4  ;;  %p1104_p10 = scmp.ne.s32.totalorder %s1301_s3, %s1103_s11  ;;  %s53_s7 = int_to_ptr.vmem [resolvable:$true] %s52_s7 }
  0x35   :  { %p1107_p11 = scmp.lt.u32.totalorder %s1103_s11, %s1301_s3 }
  0x37   :  { %p1109_p12 = pnand %p1107_p11, %p1104_p10 }
  0x39   :  { %1112 = shalt.err (!%p1109_p12)
}
  0x3a   :  { %s1113_s16 = scalar_lea.vmem %s53_s7, 256  ;;  %p1118_p0 = scmp.lt.s32.totalorder %s53_s7, %s53_s7 }
  0x3b   :  { %p1114_p13 = scmp.ne.s32.totalorder %s53_s7, %s1113_s16  ;;  %p1119_p1 = scmp.lt.s32.totalorder %s1113_s16, %s1113_s16 }
  0x3d   :  { %p1120_p2 = por %p1119_p1, %p1118_p0 }
  0x3f   :  { %p1121_p3 = pnand %p1120_p2, %p1114_p13 }
  0x41   :  { %1124 = shalt.err (!%p1121_p3)
}
  0x42   :  { %s1137_s2 = smov 128   ;;  %s1138_s28 = smov 8  }
  0x43   :  { %58 = dma.hbm_to_vmem [thread:$0]  %s1301_s3, 256, %s53_s7, [#allocation8], %s1137_s2, %s1137_s2, %s1138_s28  }
  0x44   :  { %1125 = dma.done.wait [#allocation3], 64  }
  0x45   :  { %1126 = vsyncadd [#allocation3], 4294967232 }
  0x46   :  { %1127 = dma.done.wait [#allocation5], 4608  }
  0x47   :  { %1128 = vsyncadd [#allocation5], 4294962688 }
  0x48   :  { %1129 = dma.done.wait [#allocation8], 256  }
  0x49   :  { %1130 = vsyncadd [#allocation8], 4294967040  ;;  %v1139_v0 = vmov 0.0   ;;  %vm1140_vm0 = vmmov 0   ;;  %v987_v1 = vld [vmem:[#allocation4] sm:$0xff]   ;;  %v988_v2 = vld [vmem:[#allocation4 + $0x8] sm:$0xff]   ;;  %v178_v35 = vlaneseq }
  0x4a   :  { %884 = vmatprep.subr.bf16.mxu0 %v1139_v0  ;;  %892 = vmatprep.mubr.msk.bf16.mxu0 %vm1140_vm0, %v1139_v0  ;;  %v989_v3 = vld [vmem:[#allocation4 + $0x10] sm:$0xff]   ;;  %vm109_vm1 = vcmask 523264   ;;  %v990_v4 = vld [vmem:[#allocation4 + $0x18] sm:$0xff]   ;;  %v991_v6 = vld [vmem:[#allocation6] sm:$0xff]   ;;  %v1141_v51 = vmov 0   ;;  %vm794_vm2 = vcmask 7168  }
  0x4b   :  { %896 = vmatprep.subr.bf16.mxu1 %v1139_v0  ;;  %912 = vmatprep.mubr.msk.bf16.mxu1 %vm1140_vm0, %v1139_v0  ;;  %v74_v5 = vld [vmem:[#allocation2] sm:$0xf]  ;;  %v992_v7 = vld [vmem:[#allocation6 + $0x8] sm:$0xff]   ;;  %v993_v8 = vld [vmem:[#allocation6 + $0x10] sm:$0xff]   ;;  %v179_v38 = vshrl.u32 %v178_v35, 7 }
  0x4c   :  { %885 = vmatpush3.bf16.msra.mxu0 %v987_v1  ;;  %897 = vmatpush3.bf16.msra.mxu1 %v991_v6  ;;  %v994_v9 = vld [vmem:[#allocation6 + $0x18] sm:$0xff]   ;;  %v995_v10 = vld [vmem:[#allocation6 + $0x20] sm:$0xff]   ;;  %v996_v11 = vld [vmem:[#allocation6 + $0x28] sm:$0xff]  }
  0x4d   :  { %886 = vmatprep.subr.bf16.mxu0 %v1139_v0  ;;  %898 = vmatprep.subr.bf16.mxu1 %v1139_v0  ;;  %v997_v12 = vld [vmem:[#allocation6 + $0x30] sm:$0xff]   ;;  %v998_v13 = vld [vmem:[#allocation6 + $0x38] sm:$0xff]   ;;  %v84_v36 = vld [vmem:[#allocation7 + $0x1] sm:$0x1]  ;;  %v1246_v43 = vsub.s32 0, %v179_v38 }
  0x4e   :  { %v83_v37 = vld [vmem:[#allocation7] sm:$0x1]  ;;  %v183_v39 = vpack.c.bf16 %v84_v36, %v84_v36  ;;  %v1000_v54 = vld [vmem:[#allocation6 + $0x48] sm:$0xff]   ;;  %v1001_v55 = vld [vmem:[#allocation6 + $0x50] sm:$0xff]  }
  0x4f   :  { %v999_v53 = vld [vmem:[#allocation6 + $0x40] sm:$0xff]   ;;  %v1002_v56 = vld [vmem:[#allocation6 + $0x58] sm:$0xff]   ;;  %v1004_v58 = vld [vmem:[#allocation6 + $0x68] sm:$0xff]  }
  0x50   :  { %887 = vmatpush3.bf16.msra.mxu0 %v988_v2  ;;  %899 = vmatpush3.bf16.msra.mxu1 %v992_v7  ;;  %v185_v44 = vpack.i.b16 %v183_v39, %v183_v39  ;;  %v1003_v57 = vld [vmem:[#allocation6 + $0x60] sm:$0xff]   ;;  %v1005_v59 = vld [vmem:[#allocation6 + $0x70] sm:$0xff]   ;;  %v1006_v60 = vld [vmem:[#allocation6 + $0x78] sm:$0xff]  }
  0x51   :  { %888 = vmatprep.subr.bf16.mxu0 %v1139_v0  ;;  %900 = vmatprep.subr.bf16.mxu1 %v1139_v0  ;;  %v1009_v35 = vld [vmem:[#allocation6 + $0x90] sm:$0xff]   ;;  %v1010_v36 = vld [vmem:[#allocation6 + $0x98] sm:$0xff]   ;;  %v1012_v38 = vld [vmem:[#allocation6 + $0xa8] sm:$0xff]  }
  0x52   :  { %v190_v48 = vrot.slane %v185_v44, %v1246_v43  ;;  %v1013_v39 = vld [vmem:[#allocation6 + $0xb0] sm:$0xff]  }
  0x54   :  { %889 = vmatpush3.bf16.msra.mxu0 %v989_v3  ;;  %901 = vmatpush3.bf16.msra.mxu1 %v993_v8 }
  0x55   :  { %890 = vmatprep.subr.bf16.mxu0 %v1139_v0  ;;  %902 = vmatprep.subr.bf16.mxu1 %v1139_v0 }
  0x58   :  { %891 = vmatpush3.bf16.msra.mxu0 %v990_v4  ;;  %903 = vmatpush3.bf16.msra.mxu1 %v994_v9 }
  0x59   :  { %916 = vmatprep.subr.bf16.mxu0 %v1139_v0  ;;  %904 = vmatprep.subr.bf16.mxu1 %v1139_v0 }
  0x5b   :  { %893 = vmatmul.mubr.msk.bf16.vlgmr.msra.gmra.mrb[0].mxu0 %vm109_vm1, %v74_v5 }
  0x5c   :  { %932 = vmatprep.mubr.msk.bf16.mxu0 %vm1140_vm0, %v1139_v0  ;;  %905 = vmatpush3.bf16.msra.mxu1 %v995_v10 }
  0x5d   :  { %906 = vmatprep.subr.bf16.mxu1 %v1139_v0  ;;  %917 = vmatpush3.bf16.msra.mxu0 %v999_v53 }
  0x5e   :  { %918 = vmatprep.subr.bf16.mxu0 %v1139_v0 }
  0x60   :  { %907 = vmatpush3.bf16.msra.mxu1 %v996_v11 }
  0x61   :  { %908 = vmatprep.subr.bf16.mxu1 %v1139_v0  ;;  %919 = vmatpush3.bf16.msra.mxu0 %v1000_v54 }
  0x62   :  { %920 = vmatprep.subr.bf16.mxu0 %v1139_v0 }
  0x64   :  { %909 = vmatpush3.bf16.msra.mxu1 %v997_v12 }
  0x65   :  { %910 = vmatprep.subr.bf16.mxu1 %v1139_v0  ;;  %921 = vmatpush3.bf16.msra.mxu0 %v1001_v55 }
  0x66   :  { %922 = vmatprep.subr.bf16.mxu0 %v1139_v0 }
  0x68   :  { %911 = vmatpush3.bf16.msra.mxu1 %v998_v13 }
  0x69   :  { %936 = vmatprep.subr.bf16.mxu1 %v1139_v0  ;;  %923 = vmatpush3.bf16.msra.mxu0 %v1002_v56 }
  0x6a   :  { %924 = vmatprep.subr.bf16.mxu0 %v1139_v0 }
  0x6d   :  { %925 = vmatpush3.bf16.msra.mxu0 %v1003_v57 }
  0x6e   :  { %926 = vmatprep.subr.bf16.mxu0 %v1139_v0 }
  0x71   :  { %927 = vmatpush3.bf16.msra.mxu0 %v1004_v58 }
  0x72   :  { %928 = vmatprep.subr.bf16.mxu0 %v1139_v0 }
  0x75   :  { %929 = vmatpush3.bf16.msra.mxu0 %v1005_v59 }
  0x76   :  { %930 = vmatprep.subr.bf16.mxu0 %v1139_v0 }
  0x79   :  { %931 = vmatpush3.bf16.msra.mxu0 %v1006_v60 }
  0x7a   :  { %956 = vmatprep.subr.bf16.mxu0 %v1139_v0 }
 0x12e   :  { %v147_v14 = vpop.f32.mrb[0].mxu0 }
 0x12f   :  { %v153_v15 = vrot.slane %v147_v14, 4  ;;  %v894_v16 = vpop.f32.mrb[1].mxu0 }
 0x130   :  { %v150_v17 = vpop.f32.mrb[2].mxu0 }
 0x131   :  { %v154_v18 = vadd.f32 %v153_v15, %v147_v14  ;;  %v895_v19 = vpop.f32.mrb[3].mxu0 }
 0x132   :  { %v210_v19 = vld [vmem:[#allocation7 + $0x3] sm:$0x1] }
 0x133   :  { %v155_v20 = vrot.slane %v154_v18, 2 }
 0x135   :  { %v156_v21 = vadd.f32 %v155_v20, %v154_v18  ;;  %v209_v20 = vld [vmem:[#allocation7 + $0x2] sm:$0x1] }
 0x137   :  { %v157_v22 = vrot.slane %v156_v21, 1 }
 0x139   :  { %v158_v23 = vadd.f32 %v157_v22, %v156_v21  ;;  %v328_v21 = vpack.c.bf16 %v210_v19, %v210_v19  ;;  %v1019_v19 = vld [vmem:[#allocation6 + $0xe0] sm:$0xff]  }
 0x13b   :  { %v160_v24 = vmul.f32 0.125, %v158_v23 }
 0x13d   :  { %v161_v25 = vsub.f32 %v147_v14, %v160_v24 }
 0x13f   :  { %v162_v26 = vmul.f32 %v161_v25, %v161_v25  ;;  %v173_v46 = vpack.c.bf16 %v161_v25, %v161_v25  ;;  %v330_v25 = vpack.i.b16 %v328_v21, %v328_v21  ;;  %v1021_v21 = vld [vmem:[#allocation6 + $0xf0] sm:$0xff]  }
 0x141   :  { %v163_v27 = vrot.slane %v162_v26, 4 }
 0x143   :  { %v164_v28 = vadd.f32 %v163_v27, %v162_v26 }
 0x145   :  { %v165_v29 = vrot.slane %v164_v28, 2 }
 0x147   :  { %v166_v30 = vadd.f32 %v165_v29, %v164_v28  ;;  %v335_v29 = vrot.slane %v330_v25, %v1246_v43 }
 0x149   :  { %v167_v31 = vrot.slane %v166_v30, 1 }
 0x14b   :  { %v168_v32 = vadd.f32 %v167_v31, %v166_v30 }
 0x14d   :  { %v169_v33 = vmul.f32 0.125, %v168_v32 }
 0x14f   :  { %v170_v34 = vadd.f32 1e-05, %v169_v33  ;;  %v1007_v33 = vld [vmem:[#allocation6 + $0x80] sm:$0xff]  }
 0x151   :  { %1023 = vrsqrt.f32 %v170_v34  ;;  %v1008_v34 = vld [vmem:[#allocation6 + $0x88] sm:$0xff]  }
 0x15b   :  { %v1024_v40 = vpop.eup %1023 }
 0x15c   :  { %v172_v41 = vmul.f32 %v1024_v40, %v83_v37  ;;  %v1011_v37 = vld [vmem:[#allocation6 + $0xa0] sm:$0xff]   ;;  %v1014_v40 = vld [vmem:[#allocation6 + $0xb8] sm:$0xff]  }
 0x15e   :  { %v174_v42 = vpack.c.bf16 %v172_v41, %v172_v41 }
 0x160   :  { %v176_v45 = vpack.i.b16 %v174_v42, %v174_v42 }
 0x162   :  { %v181_v47 = vrot.slane %v176_v45, %v1246_v43 }
 0x164   :  { %v182_v49 = vmul.bf16 %v181_v47, %v173_v46 }
 0x166   :  { %v191_v50 = vadd.bf16 %v190_v48, %v182_v49 }
 0x168   :  { %v192_v52 = vmax.bf16 %v1141_v51, %v191_v50 }
 0x16a   :  { %913 = vmatmul.mubr.bf16.vlgmr.msra.gmra.mrb[0].mxu1 %v192_v52 }
 0x16b   :  { %952 = vmatprep.mubr.msk.bf16.mxu1 %vm1140_vm0, %v1139_v0  ;;  %937 = vmatpush3.bf16.msra.mxu1 %v1007_v33 }
 0x16c   :  { %938 = vmatprep.subr.bf16.mxu1 %v1139_v0 }
 0x16f   :  { %939 = vmatpush3.bf16.msra.mxu1 %v1008_v34 }
 0x170   :  { %940 = vmatprep.subr.bf16.mxu1 %v1139_v0 }
 0x173   :  { %941 = vmatpush3.bf16.msra.mxu1 %v1009_v35 }
 0x174   :  { %942 = vmatprep.subr.bf16.mxu1 %v1139_v0 }
 0x177   :  { %943 = vmatpush3.bf16.msra.mxu1 %v1010_v36 }
 0x178   :  { %944 = vmatprep.subr.bf16.mxu1 %v1139_v0 }
 0x17b   :  { %945 = vmatpush3.bf16.msra.mxu1 %v1011_v37 }
 0x17c   :  { %946 = vmatprep.subr.bf16.mxu1 %v1139_v0 }
 0x17f   :  { %947 = vmatpush3.bf16.msra.mxu1 %v1012_v38 }
 0x180   :  { %948 = vmatprep.subr.bf16.mxu1 %v1139_v0 }
 0x183   :  { %949 = vmatpush3.bf16.msra.mxu1 %v1013_v39 }
 0x184   :  { %950 = vmatprep.subr.bf16.mxu1 %v1139_v0 }
 0x187   :  { %951 = vmatpush3.bf16.msra.mxu1 %v1014_v40 }
 0x23d   :  { %v293_v61 = vpop.f32.mrb[0].mxu1 }
 0x23e   :  { %v299_v62 = vrot.slane %v293_v61, 4  ;;  %v914_v63 = vpop.f32.mrb[1].mxu1 }
 0x23f   :  { %v296_v1 = vpop.f32.mrb[2].mxu1 }
 0x240   :  { %v300_v2 = vadd.f32 %v299_v62, %v293_v61  ;;  %v915_v3 = vpop.f32.mrb[3].mxu1  ;;  %v355_v1 = vld [vmem:[#allocation7 + $0x5] sm:$0x1] }
 0x241   :  { %v473_v3 = vpack.c.bf16 %v355_v1, %v355_v1 }
 0x242   :  { %v301_v4 = vrot.slane %v300_v2, 2 }
 0x244   :  { %v302_v5 = vadd.f32 %v301_v4, %v300_v2  ;;  %v354_v2 = vld [vmem:[#allocation7 + $0x4] sm:$0x1] }
 0x246   :  { %v303_v6 = vrot.slane %v302_v5, 1 }
 0x248   :  { %v304_v7 = vadd.f32 %v303_v6, %v302_v5 }
 0x24a   :  { %v305_v8 = vmul.f32 0.125, %v304_v7  ;;  %v475_v7 = vpack.i.b16 %v473_v3, %v473_v3 }
 0x24c   :  { %v306_v9 = vsub.f32 %v293_v61, %v305_v8 }
 0x24e   :  { %v307_v10 = vmul.f32 %v306_v9, %v306_v9  ;;  %v318_v27 = vpack.c.bf16 %v306_v9, %v306_v9 }
 0x250   :  { %v308_v11 = vrot.slane %v307_v10, 4 }
 0x252   :  { %v309_v12 = vadd.f32 %v308_v11, %v307_v10  ;;  %v480_v11 = vrot.slane %v475_v7, %v1246_v43 }
 0x254   :  { %v310_v13 = vrot.slane %v309_v12, 2 }
 0x256   :  { %v311_v14 = vadd.f32 %v310_v13, %v309_v12 }
 0x258   :  { %v312_v15 = vrot.slane %v311_v14, 1 }
 0x25a   :  { %v313_v16 = vadd.f32 %v312_v15, %v311_v14  ;;  %v1015_v15 = vld [vmem:[#allocation6 + $0xc0] sm:$0xff]  }
 0x25c   :  { %v314_v17 = vmul.f32 0.125, %v313_v16  ;;  %v1016_v16 = vld [vmem:[#allocation6 + $0xc8] sm:$0xff]  }
 0x25e   :  { %v315_v18 = vadd.f32 1e-05, %v314_v17  ;;  %v1017_v17 = vld [vmem:[#allocation6 + $0xd0] sm:$0xff]  }
 0x260   :  { %1025 = vrsqrt.f32 %v315_v18  ;;  %v1018_v18 = vld [vmem:[#allocation6 + $0xd8] sm:$0xff]  }
 0x26a   :  { %v1026_v22 = vpop.eup %1025 }
 0x26b   :  { %v317_v23 = vmul.f32 %v1026_v22, %v209_v20  ;;  %v1020_v20 = vld [vmem:[#allocation6 + $0xe8] sm:$0xff]   ;;  %v1022_v22 = vld [vmem:[#allocation6 + $0xf8] sm:$0xff]  }
 0x26d   :  { %v319_v24 = vpack.c.bf16 %v317_v23, %v317_v23 }
 0x26f   :  { %v321_v26 = vpack.i.b16 %v319_v24, %v319_v24 }
 0x271   :  { %v326_v28 = vrot.slane %v321_v26, %v1246_v43 }
 0x273   :  { %v327_v30 = vmul.bf16 %v326_v28, %v318_v27 }
 0x275   :  { %v336_v31 = vadd.bf16 %v335_v29, %v327_v30 }
 0x277   :  { %v337_v32 = vmax.bf16 %v1141_v51, %v336_v31 }
 0x279   :  { %933 = vmatmul.mubr.bf16.vlgmr.msra.gmra.mrb[4].mxu0 %v337_v32 }
 0x27a   :  { %972 = vmatprep.mubr.msk.bf16.mxu0 %vm1140_vm0, %v1139_v0  ;;  %957 = vmatpush3.bf16.msra.mxu0 %v1015_v15 }
 0x27b   :  { %958 = vmatprep.subr.bf16.mxu0 %v1139_v0 }
 0x27e   :  { %959 = vmatpush3.bf16.msra.mxu0 %v1016_v16 }
 0x27f   :  { %960 = vmatprep.subr.bf16.mxu0 %v1139_v0 }
 0x282   :  { %961 = vmatpush3.bf16.msra.mxu0 %v1017_v17  ;;  %v645_v17 = vld [vmem:[#allocation7 + $0x9] sm:$0x1] }
 0x283   :  { %962 = vmatprep.subr.bf16.mxu0 %v1139_v0 }
 0x286   :  { %963 = vmatpush3.bf16.msra.mxu0 %v1018_v18  ;;  %v644_v18 = vld [vmem:[#allocation7 + $0x8] sm:$0x1] }
 0x287   :  { %964 = vmatprep.subr.bf16.mxu0 %v1139_v0 }
 0x28a   :  { %965 = vmatpush3.bf16.msra.mxu0 %v1019_v19  ;;  %v763_v19 = vpack.c.bf16 %v645_v17, %v645_v17 }
 0x28b   :  { %966 = vmatprep.subr.bf16.mxu0 %v1139_v0 }
 0x28e   :  { %967 = vmatpush3.bf16.msra.mxu0 %v1020_v20 }
 0x28f   :  { %968 = vmatprep.subr.bf16.mxu0 %v1139_v0 }
 0x292   :  { %969 = vmatpush3.bf16.msra.mxu0 %v1021_v21 }
 0x293   :  { %970 = vmatprep.subr.bf16.mxu0 %v1139_v0 }
 0x296   :  { %971 = vmatpush3.bf16.msra.mxu0 %v1022_v22 }
 0x34c   :  { %v438_v41 = vpop.f32.mrb[4].mxu0 }
 0x34d   :  { %v444_v42 = vrot.slane %v438_v41, 4  ;;  %v934_v44 = vpop.f32.mrb[5].mxu0 }
 0x34e   :  { %v441_v45 = vpop.f32.mrb[6].mxu0  ;;  %v500_v44 = vld [vmem:[#allocation7 + $0x7] sm:$0x1] }
 0x34f   :  { %v445_v46 = vadd.f32 %v444_v42, %v438_v41  ;;  %v935_v47 = vpop.f32.mrb[7].mxu0  ;;  %v499_v45 = vld [vmem:[#allocation7 + $0x6] sm:$0x1] }
 0x351   :  { %v446_v48 = vrot.slane %v445_v46, 2 }
 0x353   :  { %v447_v49 = vadd.f32 %v446_v48, %v445_v46  ;;  %v618_v46 = vpack.c.bf16 %v500_v44, %v500_v44 }
 0x355   :  { %v448_v50 = vrot.slane %v447_v49, 1 }
 0x357   :  { %v449_v52 = vadd.f32 %v448_v50, %v447_v49  ;;  %v620_v50 = vpack.i.b16 %v618_v46, %v618_v46 }
 0x359   :  { %v450_v53 = vmul.f32 0.125, %v449_v52 }
 0x35b   :  { %v451_v54 = vsub.f32 %v438_v41, %v450_v53 }
 0x35d   :  { %v452_v55 = vmul.f32 %v451_v54, %v451_v54  ;;  %v463_v9 = vpack.c.bf16 %v451_v54, %v451_v54 }
 0x35f   :  { %v453_v56 = vrot.slane %v452_v55, 4 }
 0x361   :  { %v454_v57 = vadd.f32 %v453_v56, %v452_v55  ;;  %v625_v55 = vrot.slane %v620_v50, %v1246_v43 }
 0x363   :  { %v455_v58 = vrot.slane %v454_v57, 2 }
 0x365   :  { %v456_v59 = vadd.f32 %v455_v58, %v454_v57 }
 0x367   :  { %v457_v60 = vrot.slane %v456_v59, 1 }
 0x369   :  { %v458_v61 = vadd.f32 %v457_v60, %v456_v59 }
 0x36b   :  { %v459_v62 = vmul.f32 0.125, %v458_v61 }
 0x36d   :  { %v460_v63 = vadd.f32 1e-05, %v459_v62 }
 0x36f   :  { %1027 = vrsqrt.f32 %v460_v63 }
 0x379   :  { %v1028_v4 = vpop.eup %1027 }
 0x37a   :  { %v462_v5 = vmul.f32 %v1028_v4, %v354_v2 }
 0x37c   :  { %v464_v6 = vpack.c.bf16 %v462_v5, %v462_v5 }
 0x37e   :  { %v466_v8 = vpack.i.b16 %v464_v6, %v464_v6 }
 0x380   :  { %v471_v10 = vrot.slane %v466_v8, %v1246_v43 }
 0x382   :  { %v472_v12 = vmul.bf16 %v471_v10, %v463_v9 }
 0x384   :  { %v481_v13 = vadd.bf16 %v480_v11, %v472_v12 }
 0x386   :  { %v482_v14 = vmax.bf16 %v1141_v51, %v481_v13 }
 0x388   :  { %953 = vmatmul.mubr.bf16.vlgmr.msra.gmra.mrb[4].mxu1 %v482_v14 }
 0x45b   :  { %v583_v23 = vpop.f32.mrb[4].mxu1 }
 0x45c   :  { %v589_v24 = vrot.slane %v583_v23, 4  ;;  %v954_v25 = vpop.f32.mrb[5].mxu1 }
 0x45d   :  { %v586_v26 = vpop.f32.mrb[6].mxu1 }
 0x45e   :  { %v590_v27 = vadd.f32 %v589_v24, %v583_v23  ;;  %v955_v28 = vpop.f32.mrb[7].mxu1 }
 0x460   :  { %v591_v29 = vrot.slane %v590_v27, 2 }
 0x462   :  { %v592_v30 = vadd.f32 %v591_v29, %v590_v27 }
 0x464   :  { %v593_v31 = vrot.slane %v592_v30, 1 }
 0x466   :  { %v594_v32 = vadd.f32 %v593_v31, %v592_v30  ;;  %v840_v31 = vld [vmem:[%s1302_s4] ss:$0 sm:$0xff] }
 0x468   :  { %v595_v33 = vmul.f32 0.125, %v594_v32 }
 0x46a   :  { %v596_v34 = vsub.f32 %v583_v23, %v595_v33  ;;  %v765_v23 = vpack.i.b16 %v763_v19, %v763_v19 }
 0x46c   :  { %v597_v35 = vmul.f32 %v596_v34, %v596_v34  ;;  %v608_v53 = vpack.c.bf16 %v596_v34, %v596_v34  ;;  %v770_v27 = vrot.slane %v765_v23, %v1246_v43  ;;  %v841_v34 = vld [vmem:[%s1302_s4 + $0x1] ss:$0 sm:$0xff] }
 0x46e   :  { %v598_v36 = vrot.slane %v597_v35, 4 }
 0x470   :  { %v599_v37 = vadd.f32 %v598_v36, %v597_v35 }
 0x472   :  { %v600_v38 = vrot.slane %v599_v37, 2 }
 0x474   :  { %v601_v39 = vadd.f32 %v600_v38, %v599_v37 }
 0x476   :  { %v602_v0 = vrot.slane %v601_v39, 1 }
 0x478   :  { %v603_v40 = vadd.f32 %v602_v0, %v601_v39 }
 0x47a   :  { %v604_v41 = vmul.f32 0.125, %v603_v40 }
 0x47c   :  { %v605_v42 = vadd.f32 1e-05, %v604_v41 }
 0x47e   :  { %1029 = vrsqrt.f32 %v605_v42 }
 0x488   :  { %v1030_v47 = vpop.eup %1029 }
 0x489   :  { %v607_v48 = vmul.f32 %v1030_v47, %v499_v45 }
 0x48b   :  { %v609_v49 = vpack.c.bf16 %v607_v48, %v607_v48 }
 0x48d   :  { %v611_v52 = vpack.i.b16 %v609_v49, %v609_v49 }
 0x48f   :  { %v616_v54 = vrot.slane %v611_v52, %v1246_v43 }
 0x491   :  { %v617_v56 = vmul.bf16 %v616_v54, %v608_v53 }
 0x493   :  { %v626_v57 = vadd.bf16 %v625_v55, %v617_v56 }
 0x495   :  { %v627_v58 = vmax.bf16 %v1141_v51, %v626_v57 }
 0x497   :  { %973 = vmatmul.mubr.bf16.vlgmr.msra.gmra.mrb[8].mxu0 %v627_v58 }
 0x56a   :  { %v728_v59 = vpop.f32.mrb[8].mxu0 }
 0x56b   :  { %v734_v60 = vrot.slane %v728_v59, 4  ;;  %v974_v61 = vpop.f32.mrb[9].mxu0 }
 0x56c   :  { %v731_v62 = vpop.f32.mrb[10].mxu0 }
 0x56d   :  { %v735_v63 = vadd.f32 %v734_v60, %v728_v59  ;;  %v975_v1 = vpop.f32.mrb[11].mxu0 }
 0x56f   :  { %v736_v2 = vrot.slane %v735_v63, 2 }
 0x571   :  { %v737_v3 = vadd.f32 %v736_v2, %v735_v63 }
 0x573   :  { %v738_v4 = vrot.slane %v737_v3, 1 }
 0x575   :  { %v739_v5 = vadd.f32 %v738_v4, %v737_v3 }
 0x577   :  { %v740_v6 = vmul.f32 0.125, %v739_v5 }
 0x579   :  { %v741_v7 = vsub.f32 %v728_v59, %v740_v6 }
 0x57b   :  { %v742_v8 = vmul.f32 %v741_v7, %v741_v7  ;;  %v753_v25 = vpack.c.bf16 %v741_v7, %v741_v7 }
 0x57d   :  { %v743_v9 = vrot.slane %v742_v8, 4 }
 0x57f   :  { %v744_v10 = vadd.f32 %v743_v9, %v742_v8 }
 0x581   :  { %v745_v11 = vrot.slane %v744_v10, 2 }
 0x583   :  { %v746_v12 = vadd.f32 %v745_v11, %v744_v10 }
 0x585   :  { %v747_v13 = vrot.slane %v746_v12, 1 }
 0x587   :  { %v748_v14 = vadd.f32 %v747_v13, %v746_v12 }
 0x589   :  { %v749_v15 = vmul.f32 0.125, %v748_v14 }
 0x58b   :  { %v750_v16 = vadd.f32 1e-05, %v749_v15 }
 0x58d   :  { %1031 = vrsqrt.f32 %v750_v16 }
 0x597   :  { %v1032_v20 = vpop.eup %1031 }
 0x598   :  { %v752_v21 = vmul.f32 %v1032_v20, %v644_v18 }
 0x59a   :  { %v754_v22 = vpack.c.bf16 %v752_v21, %v752_v21 }
 0x59c   :  { %v756_v24 = vpack.i.b16 %v754_v22, %v754_v22 }
 0x59e   :  { %v761_v26 = vrot.slane %v756_v24, %v1246_v43 }
 0x5a0   :  { %v762_v28 = vmul.bf16 %v761_v26, %v753_v25 }
 0x5a2   :  { %v771_v29 = vadd.bf16 %v770_v27, %v762_v28 }
 0x5a4   :  { %v772_v30 = vmax.bf16 %v1141_v51, %v771_v29 }
 0x5a6   :  { %v775_v32 = vunpack.c.l.bf16 %v772_v30 }
 0x5a8   :  { %v780_v33 = vmul.f32 %v840_v31, %v775_v32 }
 0x5aa   :  { %781 = vadd.xlane.f32.xlu0 %v780_v33 }
 0x637   :  { %v782_v35 = vpop.xlane.xlu0 %781 }
 0x638   :  { %v787_v36 = vadd.f32 %v841_v34, %v782_v35 }
 0x63a   :  { %v842_v37 = vmul.f32 -1.442695, %v787_v36 }
 0x63c   :  { %1033 = vpow2.f32 %v842_v37 }
 0x646   :  { %v1034_v43 = vpop.eup %1033 }
 0x647   :  { %v791_v38 = vadd.f32 1.0, %v1034_v43 }
 0x649   :  { %1035 = vrcp.f32 %v791_v38 }
 0x653   :  { %v1036_v51 = vpop.eup %1035 }
 0x654   :  { %795 = vst.msk [vmem:[%s1303_s5] sm:$0xff] %vm794_vm2, %v1036_v51 }
 0x655   :  { %800 = vsyncpa [#allocation3], 1 }
 0x656   :  { %801 = vsyncpa [#allocation5], 1 }
 0x657   :  { %802 = vsyncpa [#allocation8], 1 }

</bundles_post_ra>
